<compile_context>
chip_gen: v7x
topology: tpu7x:2x2x1
jax: 0.10.0
libtpu: 0.0.40
codegen_flags: <defaults>
</compile_context>

<pallas_src>
import jax
import jax.numpy as jnp
from jax.experimental import pallas as pl
from jax.experimental.pallas import tpu as pltpu
from functools import partial
from math import sqrt

CIN = 64
COUT = 64
KH = KW = 3


def _round_up(x, m):
    return -(-x // m) * m


def _pick_block_h(N, H, W, in_bytes, out_bytes):
    """Largest multiple-of-8 strip height whose VMEM working set fits ~14 MiB,
    capped so the (N, S) grid keeps enough steps for both v7x TensorCores."""
    wp2 = _round_up(W + 2, 8)

    def working_set(th):
        return (2 * th * wp2 * CIN * in_bytes           # input strip, dbl-buffered
                + 2 * 2 * wp2 * CIN * in_bytes          # 2-row halo, dbl-buffered
                + th * wp2 * KH * CIN * in_bytes        # (kh,cin) im2col patch
                + th * wp2 * KW * COUT * 4              # f32 MXU result
                + 3 * th * W * COUT * 4                 # shifted-slice temps / acc
                + 2 * th * W * COUT * out_bytes         # output strip, dbl-buffered
                + 2 * KH * CIN * KW * COUT * in_bytes)  # weights

    h8 = _round_up(H, 8)
    budget = 14 * 1024 * 1024                           # v7x-safe working set
    th = 8
    while th + 8 <= h8 and working_set(th + 8) <= budget:
        th += 8

    # Keep >= ~8 grid steps total so both v7x TCs get work and the pipeline
    # has steps to hide DMA; big strips buy nothing (per-step overhead ~0.35us).
    min_strips = max(1, -(-8 // N))
    th_occ = max(8, (H // min_strips) // 8 * 8) if H // min_strips >= 8 else 8
    return max(8, min(th, th_occ))


def conv_relu_kernel(xa_ref, xb_ref, w_ref, o_ref):
    # xa_ref: (1, TH, WP2, CIN)   padded rows [s*TH, s*TH+TH)      (matmul dtype)
    # xb_ref: (1, 2,  WP2, CIN)   padded rows [s*TH+TH, s*TH+TH+2) (bottom halo)
    # w_ref:  (KH*CIN, KW*COUT)   (kh,cin) x (kw,cout) weights, VMEM resident
    # o_ref:  (1, TH, W, COUT)    output strip
    th = o_ref.shape[1]
    wout = o_ref.shape[2]
    wp2 = xa_ref.shape[2]

    # (TH+2)-row window assembled from the two non-overlapping HBM blocks.
    window = jnp.concatenate([xa_ref[0], xb_ref[0]], axis=0)     # (TH+2, WP2, CIN)

    # H-only im2col: contraction dim K = (kh, cin) = 192.
    xcat = jnp.concatenate([window[kh:kh + th] for kh in range(KH)], axis=-1)
    patch = xcat.reshape(th * wp2, KH * CIN)                      # (M, 192)

    # Single MXU matmul per strip: M x 192 x 192 (N carries (kw, cout)).
    q = jnp.dot(patch, w_ref[...], preferred_element_type=jnp.float32)

    # Combine the 3 kw partials with shifted adds (VPU), then ReLU.
    acc = None
    for kw in range(KW):                                          # static unroll
        q_kw = q[:, kw * COUT:(kw + 1) * COUT].reshape(th, wp2, COUT)
        term = q_kw[:, kw:kw + wout, :]
        acc = term if acc is None else acc + term
    out = jnp.maximum(acc, 0.0)
    o_ref[...] = out.reshape(1, th, wout, COUT).astype(o_ref.dtype)


@partial(jax.jit, static_argnames=("block_h", "matmul_dtype", "out_dtype"))
def conv_relu_block_nhwc(x_nhwc, weight_oihw, *, block_h=None,
                         matmul_dtype=jnp.bfloat16, out_dtype=None):
    """NHWC-native Conv_ReLU_Block (recommended path for a stacked VDSR).

    x_nhwc:      (N, H, W, 64)
    weight_oihw: (64, 64, 3, 3)   PyTorch OIHW conv weight
    returns:     (N, H, W, 64) in out_dtype (default: x dtype)
    """
    N, H, W, C = x_nhwc.shape
    assert C == CIN, f"Conv_ReLU_Block expects {CIN} input channels, got {C}"
    out_dtype = x_nhwc.dtype if out_dtype is None else out_dtype
    in_bytes = jnp.dtype(matmul_dtype).itemsize
    out_bytes = jnp.dtype(out_dtype).itemsize

    if block_h is None:
        block_h = _pick_block_h(N, H, W, in_bytes, out_bytes)
    block_h = max(8, _round_up(block_h, 8))
    num_strips = pl.cdiv(H, block_h)

    wp2 = _round_up(W + 2, 8)            # padded width: keeps reshapes 8-aligned
    hp2 = num_strips * block_h + 2       # padded height: whole strips + 2 halo rows

    # Single layout pass (fused under jit): cast to matmul dtype + zero pad.
    x_pad = jnp.pad(x_nhwc.astype(matmul_dtype),
                    ((0, 0), (1, hp2 - H - 1), (1, wp2 - W - 1), (0, 0)))

    # OIHW -> (kh*cin, kw*cout): K = (kh,cin) = 192, N = (kw,cout) = 192.
    w2 = jnp.transpose(weight_oihw, (2, 1, 3, 0)).reshape(KH * CIN, KW * COUT)
    w2 = w2.astype(matmul_dtype)

    half = block_h // 2                  # halo block index stride (2-row blocks)
    out = pl.pallas_call(
        conv_relu_kernel,
        out_shape=jax.ShapeDtypeStruct((N, H, W, COUT), out_dtype),
        grid_spec=pltpu.PrefetchScalarGridSpec(
            num_scalar_prefetch=0,
            grid=(N, num_strips),
            in_specs=[
                # strip body: rows [s*TH, s*TH+TH) of x_pad
                pl.BlockSpec((1, block_h, wp2, CIN), lambda n, s: (n, s, 0, 0)),
                # 2-row bottom halo: rows [s*TH+TH, s*TH+TH+2) (same array)
                pl.BlockSpec((1, 2, wp2, CIN),
                             lambda n, s: (n, (s + 1) * half, 0, 0)),
                # kw-folded weights, grid-invariant
                pl.BlockSpec((KH * CIN, KW * COUT), lambda n, s: (0, 0)),
            ],
            out_specs=pl.BlockSpec((1, block_h, W, COUT),
                                   lambda n, s: (n, s, 0, 0)),
        ),
        compiler_params=pltpu.CompilerParams(
            dimension_semantics=("parallel", "parallel"),
            vmem_limit_bytes=40 * 1024 * 1024),
    )(x_pad, x_pad, w2)
    return out


@partial(jax.jit, static_argnames=("block_h", "matmul_dtype", "out_dtype"))
def conv_relu_block(x_nchw, weight_oihw, *, block_h=None,
                    matmul_dtype=jnp.bfloat16, out_dtype=None):
    """NCHW drop-in matching the PyTorch module interface.

    For a stacked VDSR use conv_relu_block_nhwc end-to-end and hoist these two
    transposes (each a full HBM pass) outside the whole stack.
    """
    x_nhwc = jnp.transpose(x_nchw, (0, 2, 3, 1))
    out = conv_relu_block_nhwc(x_nhwc, weight_oihw, block_h=block_h,
                               matmul_dtype=matmul_dtype, out_dtype=out_dtype)
    return jnp.transpose(out, (0, 3, 1, 2))


if __name__ == "__main__":
    key = jax.random.PRNGKey(0)
    kx, kw_, kx2 = jax.random.split(key, 3)

    # Channels are fixed at 64 by the module; deterministic VDSR-style init.
    std = sqrt(2.0 / (KH * KW * COUT))
    weight = std * jax.random.normal(kw_, (COUT, CIN, KH, KW), dtype=jnp.float32)

    def reference(x, w):
        y = jax.lax.conv_general_dilated(
            x, w, window_strides=(1, 1), padding=((1, 1), (1, 1)),
            dimension_numbers=("NCHW", "OIHW", "NCHW"))
        return jnp.maximum(y, 0.0)

    # Case 1: aligned shapes, block_h=8 -> (N=2, S=2) grid exercises the
    # two-BlockSpec strip + halo path.
    N, H, W = 2, 16, 16
    x = jax.random.normal(kx, (N, CIN, H, W), dtype=jnp.float32)
    out = conv_relu_block(x, weight, block_h=8)
    jax.block_until_ready(out)

    xb = x.astype(jnp.bfloat16).astype(jnp.float32)
    wb = weight.astype(jnp.bfloat16).astype(jnp.float32)
    assert jnp.allclose(out, reference(xb, wb), atol=5e-3, rtol=5e-3), \
        "mismatch vs bf16-operand reference (case 1)"
    assert jnp.allclose(out, reference(x, weight), atol=7.5e-2, rtol=7.5e-2), \
        "mismatch vs f32 reference (case 1)"

    # Case 2: ragged H / unaligned W -> partial last output strip (masked) and
    # right width padding.
    N2, H2, W2 = 1, 20, 24
    x2 = jax.random.normal(kx2, (N2, CIN, H2, W2), dtype=jnp.float32)
    out2 = conv_relu_block(x2, weight, block_h=16)
    jax.block_until_ready(out2)
    x2b = x2.astype(jnp.bfloat16).astype(jnp.float32)
    assert jnp.allclose(out2, reference(x2b, wb), atol=5e-3, rtol=5e-3), \
        "mismatch vs bf16-operand reference (case 2, ragged)"

    print("KERNEL_OK")
</pallas_src>

<mosaic_0001>
module attributes {stable_mosaic.version = 11 : i64} {
  func.func @conv_relu_kernel(%arg0: i32, %arg1: i32, %arg2: memref<1x8x24x64xbf16, #tpu.memory_space<vmem>>, %arg3: memref<1x2x24x64xbf16, #tpu.memory_space<vmem>>, %arg4: memref<192x192xbf16, #tpu.memory_space<vmem>>, %arg5: memref<1x8x16x64xf32, #tpu.memory_space<vmem>>) attributes {dimension_semantics = [#tpu.dimension_semantics<parallel>, #tpu.dimension_semantics<parallel>], iteration_bounds = array<i64: 2, 2>, scalar_prefetch = 0 : i64, scratch_operands = 0 : i64, tpu.core_type = #tpu.core_type<tc>, window_params = [{transform_indices = @transform_0, window_bounds = array<i64: 1, 8, 24, 64>}, {transform_indices = @transform_1, window_bounds = array<i64: 1, 2, 24, 64>}, {pipeline_mode = #tpu.pipeline_mode<synchronous>, transform_indices = @transform_2, window_bounds = array<i64: 192, 192>}, {transform_indices = @transform_3, window_bounds = array<i64: 1, 8, 16, 64>}]} {
    %c0 = arith.constant 0 : index
    %c0_0 = arith.constant 0 : index
    %c0_1 = arith.constant 0 : index
    %c0_2 = arith.constant 0 : index
    %0 = vector.load %arg2[%c0, %c0_0, %c0_1, %c0_2] : memref<1x8x24x64xbf16, #tpu.memory_space<vmem>>, vector<1x8x24x64xbf16>
    %1 = vector.shape_cast %0 : vector<1x8x24x64xbf16> to vector<8x24x64xbf16>
    %c0_3 = arith.constant 0 : index
    %c0_4 = arith.constant 0 : index
    %c0_5 = arith.constant 0 : index
    %c0_6 = arith.constant 0 : index
    %2 = vector.load %arg3[%c0_3, %c0_4, %c0_5, %c0_6] : memref<1x2x24x64xbf16, #tpu.memory_space<vmem>>, vector<1x2x24x64xbf16>
    %3 = vector.shape_cast %2 : vector<1x2x24x64xbf16> to vector<2x24x64xbf16>
    %4 = tpu.concatenate %1, %3 in 0 : vector<8x24x64xbf16>, vector<2x24x64xbf16> -> vector<10x24x64xbf16>
    %5 = vector.extract_strided_slice %4 {offsets = [0, 0, 0], sizes = [8, 24, 64], strides = [1, 1, 1]} : vector<10x24x64xbf16> to vector<8x24x64xbf16>
    %6 = vector.extract_strided_slice %4 {offsets = [1, 0, 0], sizes = [8, 24, 64], strides = [1, 1, 1]} : vector<10x24x64xbf16> to vector<8x24x64xbf16>
    %7 = vector.extract_strided_slice %4 {offsets = [2, 0, 0], sizes = [8, 24, 64], strides = [1, 1, 1]} : vector<10x24x64xbf16> to vector<8x24x64xbf16>
    %8 = tpu.concatenate %5, %6, %7 in 2 : vector<8x24x64xbf16>, vector<8x24x64xbf16>, vector<8x24x64xbf16> -> vector<8x24x192xbf16>
    %9 = vector.shape_cast %8 : vector<8x24x192xbf16> to vector<192x192xbf16>
    %c0_7 = arith.constant 0 : index
    %c0_8 = arith.constant 0 : index
    %10 = vector.load %arg4[%c0_7, %c0_8] : memref<192x192xbf16, #tpu.memory_space<vmem>>, vector<192x192xbf16>
    %cst = arith.constant dense<0.000000e+00> : vector<192x192xf32>
    %11 = tpu.matmul %9, %10, %cst {dimension_numbers = #tpu.dot_dimension_numbers<[1], [0], [0], [1], [0, 0, 1, 1], [], []>} : vector<192x192xbf16>, vector<192x192xbf16>, vector<192x192xf32> -> vector<192x192xf32>
    %12 = vector.extract_strided_slice %11 {offsets = [0, 0], sizes = [192, 64], strides = [1, 1]} : vector<192x192xf32> to vector<192x64xf32>
    %13 = vector.shape_cast %12 : vector<192x64xf32> to vector<8x24x64xf32>
    %14 = vector.extract_strided_slice %13 {offsets = [0, 0, 0], sizes = [8, 16, 64], strides = [1, 1, 1]} : vector<8x24x64xf32> to vector<8x16x64xf32>
    %15 = vector.extract_strided_slice %11 {offsets = [0, 64], sizes = [192, 64], strides = [1, 1]} : vector<192x192xf32> to vector<192x64xf32>
    %16 = vector.shape_cast %15 : vector<192x64xf32> to vector<8x24x64xf32>
    %17 = vector.extract_strided_slice %16 {offsets = [0, 1, 0], sizes = [8, 16, 64], strides = [1, 1, 1]} : vector<8x24x64xf32> to vector<8x16x64xf32>
    %18 = arith.addf %14, %17 : vector<8x16x64xf32>
    %19 = vector.extract_strided_slice %11 {offsets = [0, 128], sizes = [192, 64], strides = [1, 1]} : vector<192x192xf32> to vector<192x64xf32>
    %20 = vector.shape_cast %19 : vector<192x64xf32> to vector<8x24x64xf32>
    %21 = vector.extract_strided_slice %20 {offsets = [0, 2, 0], sizes = [8, 16, 64], strides = [1, 1, 1]} : vector<8x24x64xf32> to vector<8x16x64xf32>
    %22 = arith.addf %18, %21 : vector<8x16x64xf32>
    %cst_9 = arith.constant 0.000000e+00 : f32
    %23 = vector.broadcast %cst_9 : f32 to vector<8x16x64xf32>
    %24 = arith.maximumf %22, %23 : vector<8x16x64xf32>
    %25 = vector.shape_cast %24 : vector<8x16x64xf32> to vector<1x8x16x64xf32>
    %c0_10 = arith.constant 0 : index
    %c0_11 = arith.constant 0 : index
    %c0_12 = arith.constant 0 : index
    %c0_13 = arith.constant 0 : index
    %26 = vector.load %arg5[%c0_10, %c0_11, %c0_12, %c0_13] : memref<1x8x16x64xf32, #tpu.memory_space<vmem>>, vector<1x8x16x64xf32>
    tpu.vector_store %arg5[%c0_10, %c0_11, %c0_12, %c0_13], %25 {strides = array<i32>} : memref<1x8x16x64xf32, #tpu.memory_space<vmem>>, vector<1x8x16x64xf32>,
    return
  }
  func.func @transform_0(%arg0: i32, %arg1: i32) -> (i32, i32, i32, i32) {
    %c0_i32 = arith.constant 0 : i32
    %c0_i32_0 = arith.constant 0 : i32
    %c0_i32_1 = arith.constant 0 : i32
    return %arg0, %arg1, %c0_i32, %c0_i32_0 : i32, i32, i32, i32
  }
  func.func @transform_1(%arg0: i32, %arg1: i32) -> (i32, i32, i32, i32) {
    %c1_i32 = arith.constant 1 : i32
    %0 = arith.addi %arg1, %c1_i32 : i32
    %c4_i32 = arith.constant 4 : i32
    %1 = arith.muli %0, %c4_i32 : i32
    %c0_i32 = arith.constant 0 : i32
    %c0_i32_0 = arith.constant 0 : i32
    %c0_i32_1 = arith.constant 0 : i32
    return %arg0, %1, %c0_i32, %c0_i32_0 : i32, i32, i32, i32
  }
  func.func @transform_2(%arg0: i32, %arg1: i32) -> (i32, i32) {
    %c0_i32 = arith.constant 0 : i32
    %c0_i32_0 = arith.constant 0 : i32
    %c0_i32_1 = arith.constant 0 : i32
    return %c0_i32, %c0_i32_0 : i32, i32
  }
  func.func @transform_3(%arg0: i32, %arg1: i32) -> (i32, i32, i32, i32) {
    %c0_i32 = arith.constant 0 : i32
    %c0_i32_0 = arith.constant 0 : i32
    %c0_i32_1 = arith.constant 0 : i32
    return %arg0, %arg1, %c0_i32, %c0_i32_0 : i32, i32, i32, i32
  }
}

</mosaic_0001>

<bundles_post_ra>
// kernel: conv_relu_block_nhwc.1
= control target key start
LH: loop header
LB: loop body
LE: loop exit
PB: predicated region body
PF: predicated region fallthrough
CT: control target
= control target key end

     0   :  { %8 = vsyncpa [#allocation3], 0  ;;  %s2280_s0 = inlined_call_operand.vmem [shape: bf16[2,18,24,64], index: 0, kind: input, shape index: {}, may-alias: {0,1}]   ;;  %s2281_s1 = inlined_call_operand.vmem [shape: bf16[2,18,24,64], index: 1, kind: input, shape index: {}, may-alias: {0,1}]   ;;  %s2282_s2 = inlined_call_operand.vmem [shape: bf16[192,192], index: 2, kind: input, shape index: {}]   ;;  %s2283_s3 = inlined_call_operand.hbm [shape: f32[2,16,16,64], index: 3, kind: output, shape index: {}]  }
   0x1   :  { %10 = vsyncpa [#allocation3 + $0x1], 0  ;;  %s1633_s12 = smov 0   ;;  %s1635_s13 = smov 0  }
   0x2   :  { %s1637_s14 = smov 0   ;;  %s1639_s15 = smov 0  }
   0x3   :  { %s1641_s16 = smov 0   ;;  %s1643_s17 = smov 0  }
   0x4   :  { %s1645_s18 = smov 0   ;;  %s1647_s19 = smov 0  }
   0x5 LB: > { %s1254_s20 = sadd.s32 4294967295, %s1607_s19   ;;  %s1255_s21 = sadd.s32 4294967294, %s1607_s19   ;;  %s1607_s19 = sphi %s1647_s19, %s16_s19   ;;  %s1603_s18 = sphi %s1645_s18, %s2295_s18   ;;  %s1599_s17 = sphi %s1643_s17, %s2294_s17   ;;  %s1595_s16 = sphi %s1641_s16, %s2293_s16   ;;  %s1591_s15 = sphi %s1639_s15, %s2292_s15   ;;  %s1587_s14 = sphi %s1637_s14, %s2291_s14   ;;  %s1583_s13 = sphi %s1635_s13, %s2290_s13   ;;  %s1579_s12 = sphi %s1633_s12, %s2289_s12  }
   0x6   : > { %s25_s22 = sadd.s32 1, %s1599_s17  ;;  %s28_s23 = sadd.s32 1, %s1603_s18 }
   0x7   : > { %p26_p0 = scmp.ge.s32.totalorder %s25_s22, 2  ;;  %p128_p1 = scmp.ne.s32.totalorder %s1587_s14, %s1583_s13 }
   0x8   : > { %p129_p2 = scmp.eq.s32.totalorder %s1254_s20, 3  ;;  %p134_p5 = scmp.ne.s32.totalorder %s1583_s13, %s1579_s12 }
   0x9   : > { %s2297_s22 = smov (%p26_p0, %s25_s22), 0  ;;  %s2299_s23 = smov (!%p26_p0, %s28_s23), %s1603_s18 }
   0xa   : > { %s114_s24 = ssub.s32 %s1599_s17, %s2297_s22  ;;  %p1684_p3 = por %p129_p2, %p128_p1 }
   0xb   : > { %p30_p4 = scmp.ge.s32.totalorder %s2299_s23, 2  ;;  %p135_p6 = scmp.eq.s32.totalorder %s1255_s21, 3 }
   0xc   : > { %p1260_p7 = scmp.ge.s32.totalorder %s1607_s19, 1  ;;  %p198_p9 = scmp.lt.s32.totalorder %s1607_s19, 5 }
   0xd   : > { %s2301_s23 = smov (%p30_p4, %s2299_s23), 0  ;;  %p1693_p8 = por %p135_p6, %p134_p5 }
   0xe   : > { %s113_s27 = ssub.s32 %s1603_s18, %s2301_s23  ;;  %s118_s28 = sadd.s32 1, %s1587_s14 }
   0xf   : > { %s115_s29 = sor.u32 %s114_s24, %s113_s27  ;;  %p199_p10 = pnand %p1260_p7, %p198_p9 }
  0x10   : > { %p116_p11 = scmp.eq.s32.totalorder %s115_s29, 0  ;;  %s1705_s4 = sshll.u32 (!%p199_p10), %s1591_s15, 3  ;;  %v1474_v0 = vld [vmem:[%s2282_s2 + $0x4] ss:$8 sps:$4 sm:$0xff] (!%p199_p10)   ;;  %v1476_v1 = vld [vmem:[%s2282_s2] ss:$8 sps:$4 sm:$0xff] (!%p199_p10)  }
  0x11   : > { %202 = sbr.rel (%p199_p10) target bundleno = 546 (0x222), region = 32  ;;  %p250_p12 = scmp.lt.s32.totalorder (!%p199_p10), %s1595_s16, 1  ;;  %720 = vmatprep.subr.bf16.mxu0 (!%p199_p10), %v1474_v0  ;;  %1350 = vmatprep.subr.bf16.mxu1 (!%p199_p10), %v1474_v0  ;;  %v1477_v2 = vld [vmem:[%s2282_s2 + $0x14] ss:$8 sps:$4 sm:$0xff] (!%p199_p10)   ;;  %v1479_v3 = vld [vmem:[%s2282_s2 + $0x10] ss:$8 sps:$4 sm:$0xff] (!%p199_p10)  }
  0x12   : > { %s1702_s30 = scalar_select %p116_p11, %s1587_s14, %s118_s28  }
  0x13   : > { %p252_p13 = scmp.lt.s32.totalorder (!%p199_p10), %s1705_s4, 17  ;;  %721 = vmatpush1.bf16.msra.mxu0 (!%p199_p10), %v1476_v1  ;;  %1362 = vmatpush1.bf16.msra.mxu1 (!%p199_p10), %v1476_v1  ;;  %s1349_s28 = sadd.s32 (!%p199_p10), 8, %s1705_s4  ;;  %v1480_v4 = vld [vmem:[%s2282_s2 + $0x24] ss:$8 sps:$4 sm:$0xff] (!%p199_p10)   ;;  %v1482_v5 = vld [vmem:[%s2282_s2 + $0x20] ss:$8 sps:$4 sm:$0xff] (!%p199_p10)  }
  0x14   : > { %722 = vmatprep.subr.bf16.mxu0 (!%p199_p10), %v1477_v2  ;;  %1351 = vmatprep.subr.bf16.mxu1 (!%p199_p10), %v1477_v2  ;;  %p1732_p0 = scmp.lt.s32.totalorder (!%p199_p10), %s1349_s28, 17  ;;  %v1483_v6 = vld [vmem:[%s2282_s2 + $0x34] ss:$8 sps:$4 sm:$0xff] (!%p199_p10)   ;;  %v1485_v7 = vld [vmem:[%s2282_s2 + $0x30] ss:$8 sps:$4 sm:$0xff] (!%p199_p10)   ;;  %vm422_vm0 = vcmask (!%p199_p10), 523264  }
  0x15   : > { %v1486_v9 = vld [vmem:[%s2282_s2 + $0x44] ss:$8 sps:$4 sm:$0xff] (!%p199_p10)   ;;  %v1488_v14 = vld [vmem:[%s2282_s2 + $0x40] ss:$8 sps:$4 sm:$0xff] (!%p199_p10)   ;;  %v1489_v18 = vld [vmem:[%s2282_s2 + $0x54] ss:$8 sps:$4 sm:$0xff] (!%p199_p10)  }
  0x16   : > { %v1491_v35 = vld [vmem:[%s2282_s2 + $0x50] ss:$8 sps:$4 sm:$0xff] (!%p199_p10)   ;;  %v1492_v39 = vld [vmem:[%s2282_s2 + $0x64] ss:$8 sps:$4 sm:$0xff] (!%p199_p10)   ;;  %v1494_v42 = vld [vmem:[%s2282_s2 + $0x60] ss:$8 sps:$4 sm:$0xff] (!%p199_p10)  }
  0x17   : > { %723 = vmatpush1.bf16.msra.mxu0 (!%p199_p10), %v1479_v3  ;;  %1363 = vmatpush1.bf16.msra.mxu1 (!%p199_p10), %v1479_v3  ;;  %v1495_v44 = vld [vmem:[%s2282_s2 + $0x74] ss:$8 sps:$4 sm:$0xff] (!%p199_p10)   ;;  %v1497_v47 = vld [vmem:[%s2282_s2 + $0x70] ss:$8 sps:$4 sm:$0xff] (!%p199_p10)   ;;  %v1498_v48 = vld [vmem:[%s2282_s2 + $0x84] ss:$8 sps:$4 sm:$0xff] (!%p199_p10)  }
  0x18   : > { %s1716_s9 = scalar_select %p250_p12, %s1595_s16, 1  ;;  %724 = vmatprep.subr.bf16.mxu0 %v1480_v4  ;;  %1352 = vmatprep.subr.bf16.mxu1 %v1480_v4  ;;  %v1500_v50 = vld [vmem:[%s2282_s2 + $0x80] ss:$8 sps:$4 sm:$0xff]   ;;  %v1501_v52 = vld [vmem:[%s2282_s2 + $0x94] ss:$8 sps:$4 sm:$0xff]   ;;  %vm897_vm1 = vcmask 1046528  }
  0x19   : > { %s253_s20 = scalar_select %p252_p13, %s1705_s4, 17  ;;  %v1503_v54 = vld [vmem:[%s2282_s2 + $0x90] ss:$8 sps:$4 sm:$0xff]   ;;  %v1504_v56 = vld [vmem:[%s2282_s2 + $0xa4] ss:$8 sps:$4 sm:$0xff]   ;;  %vm1026_vm2 = vcmask 1045504  }
  0x1a   : > { %s2284_s27 = smul.u32 54, %s1716_s9  ;;  %s2303_s28 = smov (!%p1732_p0, %s1349_s28), 17  ;;  %v1506_v58 = vld [vmem:[%s2282_s2 + $0xa0] ss:$8 sps:$4 sm:$0xff]   ;;  %v1507_v59 = vld [vmem:[%s2282_s2 + $0xb4] ss:$8 sps:$4 sm:$0xff]  }
  0x1b   : > { %s1374_s6 = smul.u32 3, %s253_s20  ;;  %725 = vmatpush1.bf16.msra.mxu0 %v1482_v5  ;;  %1364 = vmatpush1.bf16.msra.mxu1 %v1482_v5  ;;  %v1509_v60 = vld [vmem:[%s2282_s2 + $0xb0] ss:$8 sps:$4 sm:$0xff]   ;;  %s1336_s24 = sshll.u32 %s1595_s16, 5 }
  0x1c   : > { %726 = vmatprep.subr.bf16.mxu0 %v1483_v6  ;;  %1353 = vmatprep.subr.bf16.mxu1 %v1483_v6  ;;  %s1610_s8 = smov [#allocation2]  }
  0x1d   : > { %s256_s7 = sadd.s32 %s2284_s27, %s1374_s6  ;;  %s1609_s27 = smov 64  }
  0x1e   : > { %s1263_s4 = sshll.u32 %s256_s7, 2  ;;  %s1517_s11 = sshll.u32 %s1610_s8, 4  ;;  %s1518_s11 = int_to_ptr.vmem [resolvable:$false] %s1517_s11 }
  0x1f   : > { %s1745_s5 = scalar_lea.vmem %s2280_s0, %s1263_s4  ;;  %s1376_s4 = smul.u32 3, %s2303_s28  ;;  %727 = vmatpush1.bf16.msra.mxu0 %v1485_v7  ;;  %1365 = vmatpush1.bf16.msra.mxu1 %v1485_v7 }
  0x20   : > { %v1751_v8 = vld [vmem:[%s1745_s5 + $0x14] ss:$0 sps:$4 sm:$0xff]   ;;  %v1757_v10 = vld [vmem:[%s1745_s5 + $0xc] sm:$0xff]   ;;  %v1766_v11 = vld [vmem:[%s1745_s5 + $0x18] sm:$0xff]   ;;  %s2288_s28 = smul.u32 54, %s1716_s9  ;;  %728 = vmatprep.subr.bf16.mxu0 %v1486_v9  ;;  %1354 = vmatprep.subr.bf16.mxu1 %v1486_v9 }
  0x21   : > { %386 = vrot.lane.b32.xlu1 %v1751_v8, %s1609_s27  ;;  %v1769_v12 = vld [vmem:[%s1745_s5 + $0x3c] sm:$0xf]  ;;  %384 = vrot.lane.b32.xlu0 %v1757_v10, %s1609_s27  ;;  %v1774_v13 = vld [vmem:[%s1745_s5 + $0x40] sm:$0xf] }
  0x22   : > { %v1781_v15 = vcombine.low %v1769_v12, %v1774_v13  ;;  %v1784_v16 = vld [vmem:[%s1745_s5 + $0x48] sm:$0xff]   ;;  %v1787_v17 = vld [vmem:[%s1745_s5 + $0x44] sm:$0xf]  ;;  %1321 = vmatprep.mubr.msk.bf16.mxu0 %vm422_vm0, %v1766_v11  ;;  %v1798_v20 = vld [vmem:[%s1745_s5 + $0x50] sm:$0xf]  ;;  %s274_s20 = sadd.s32 %s1376_s4, %s2288_s28  ;;  %s1519_s4 = scalar_lea.vmem %s1518_s11, 4096 }
  0x23   : > { %v1290_v19 = vcombine.low %v1774_v13, %v1787_v17  ;;  %v1801_v21 = vld [vmem:[%s1745_s5 + $0x20] sm:$0xf]  ;;  %v1804_v22 = vld [vmem:[%s1745_s5 + $0x24] sm:$0xf]  ;;  %v1809_v23 = vld [vmem:[%s1745_s5 + $0x28] sm:$0xf]  ;;  %v1825_v27 = vcombine.low %v1787_v17, %v1787_v17  ;;  %1327 = vmatprep.mubr.msk.bf16.mxu1 %vm422_vm0, %v1784_v16  ;;  %729 = vmatpush1.bf16.msra.mxu0 %v1488_v14  ;;  %v1858_v36 = vcombine.low %v1798_v20, %v1798_v20 }
  0x24   : > { %v1286_v24 = vcombine.low %v1801_v21, %v1804_v22  ;;  %v1814_v25 = vld [vmem:[%s1745_s5 + $0x54] sm:$0xf]  ;;  %v1817_v26 = vld [vmem:[%s1745_s5 + $0x2c] sm:$0xf]  ;;  %s1266_s29 = sshll.u32 %s274_s20, 2  ;;  %730 = vmatprep.subr.bf16.mxu0 %v1489_v18  ;;  %v1873_v40 = vcombine.low %v1801_v21, %v1801_v21  ;;  %1366 = vmatpush1.bf16.msra.mxu1 %v1488_v14  ;;  %v1893_v45 = vcombine.low %v1804_v22, %v1809_v23  ;;  %v1511_v61 = vld [vmem:[%s1745_s5] sm:$0xff]  }
  0x25   : > { %388 = vrot.lane.b32.xlu1 %v1766_v11, %s1609_s27  ;;  %400 = vrot.lane.b32.xlu0 %v1781_v15, %s1609_s27  ;;  %v1292_v28 = vcombine.low %v1798_v20, %v1814_v25  ;;  %v1287_v29 = vcombine.low %v1809_v23, %v1817_v26  ;;  %v1832_v30 = vld [vmem:[%s1745_s5 + $0x58] sm:$0xf]  ;;  %v1835_v31 = vld [vmem:[%s1745_s5 + $0x5c] sm:$0xf]  ;;  %s1840_s7 = scalar_lea.vmem %s2281_s1, %s1266_s29  ;;  %v1910_v49 = vcombine.low %v1817_v26, %v1817_v26 }
  0x26   : > { %v1843_v32 = vld [vmem:[%s1745_s5 + $0x38] sm:$0xf]  ;;  %v1293_v33 = vcombine.low %v1832_v30, %v1835_v31  ;;  %v1861_v37 = vld [vmem:[%s1840_s7 + $0x8] sm:$0xf]  ;;  %v1864_v38 = vld [vmem:[%s1840_s7 + $0xc] sm:$0xf]  ;;  %1355 = vmatprep.subr.bf16.mxu1 %v1489_v18  ;;  %v1884_v43 = vcombine.low %v1814_v25, %v1832_v30  ;;  %v1927_v53 = vcombine.low %v1835_v31, %v1835_v31 }
  0x27   : > { %v1289_v34 = vcombine.low %v1843_v32, %v1769_v12  ;;  %v1295_v41 = vcombine.low %v1861_v37, %v1864_v38  ;;  %731 = vmatpush1.bf16.msra.mxu0 %v1491_v35  ;;  %v1896_v46 = vld [vmem:[%s1745_s5 + $0x30] sm:$0xff]   ;;  %v1918_v51 = vld [vmem:[%s1840_s7] sm:$0xff]   ;;  %v1284_v55 = vcombine.low %v1861_v37, %v1861_v37  ;;  %v1276_v57 = vcombine.low %v1843_v32, %v1843_v32  ;;  %v1510_v1 = vld [vmem:[%s1745_s5 + $0x8] ss:$0 sps:$4 sm:$0xff]   ;;  %s241_s5 = sand.u32 1, %s1583_s13  }
  0x28   : > { %732 = vmatprep.subr.bf16.mxu0 %v1492_v39  ;;  %1367 = vmatpush1.bf16.msra.mxu1 %v1491_v35  ;;  %s2228_s6 = scalar_lea.sflag [#allocation3], %s241_s5 }
  0x29   : > { %404 = vrot.lane.b32.xlu1 %v1784_v16, %s1609_s27  ;;  %402 = vrot.lane.b32.xlu0 %v1825_v27, %s1609_s27 }
  0x2a   : > { %1356 = vmatprep.subr.bf16.mxu1 %v1492_v39 }
  0x2b   : > { %733 = vmatpush1.bf16.msra.mxu0 %v1494_v42 }
  0x2c   : > { %734 = vmatprep.subr.bf16.mxu0 %v1495_v44  ;;  %1368 = vmatpush1.bf16.msra.mxu1 %v1494_v42 }
  0x2d   : > { %406 = vrot.lane.b32.xlu1 %v1858_v36, %s1609_s27  ;;  %390 = vrot.lane.b32.xlu0 %v1873_v40, %s1609_s27 }
  0x2e   : > { %1357 = vmatprep.subr.bf16.mxu1 %v1495_v44 }
  0x2f   : > { %735 = vmatpush1.bf16.msra.mxu0 %v1497_v47 }
  0x30   : > { %736 = vmatprep.subr.bf16.mxu0 %v1498_v48  ;;  %1369 = vmatpush1.bf16.msra.mxu1 %v1497_v47 }
  0x31   : > { %408 = vrot.lane.b32.xlu1 %v1884_v43, %s1609_s27  ;;  %392 = vrot.lane.b32.xlu0 %v1893_v45, %s1609_s27 }
  0x32   : > { %1358 = vmatprep.subr.bf16.mxu1 %v1498_v48 }
  0x33   : > { %737 = vmatpush1.bf16.msra.mxu0 %v1500_v50 }
  0x34   : > { %738 = vmatprep.subr.bf16.mxu0 %v1501_v52  ;;  %1370 = vmatpush1.bf16.msra.mxu1 %v1500_v50 }
  0x35   : > { %396 = vrot.lane.b32.xlu1 %v1896_v46, %s1609_s27  ;;  %394 = vrot.lane.b32.xlu0 %v1910_v49, %s1609_s27 }
  0x36   : > { %1359 = vmatprep.subr.bf16.mxu1 %v1501_v52 }
  0x37   : > { %739 = vmatpush1.bf16.msra.mxu0 %v1503_v54 }
  0x38   : > { %740 = vmatprep.subr.bf16.mxu0 %v1504_v56  ;;  %1371 = vmatpush1.bf16.msra.mxu1 %v1503_v54 }
  0x39   : > { %412 = vrot.lane.b32.xlu1 %v1918_v51, %s1609_s27  ;;  %410 = vrot.lane.b32.xlu0 %v1927_v53, %s1609_s27 }
  0x3a   : > { %1360 = vmatprep.subr.bf16.mxu1 %v1504_v56 }
  0x3b   : > { %741 = vmatpush1.bf16.msra.mxu0 %v1506_v58 }
  0x3c   : > { %742 = vmatprep.subr.bf16.mxu0 %v1507_v59  ;;  %1372 = vmatpush1.bf16.msra.mxu1 %v1506_v58 }
  0x3d   : > { %414 = vrot.lane.b32.xlu1 %v1284_v55, %s1609_s27  ;;  %398 = vrot.lane.b32.xlu0 %v1276_v57, %s1609_s27 }
  0x3e   : > { %1361 = vmatprep.subr.bf16.mxu1 %v1507_v59 }
  0x3f   : > { %743 = vmatpush1.bf16.msra.mxu0 %v1509_v60 }
  0x40   : > { %1373 = vmatpush1.bf16.msra.mxu1 %v1509_v60 }
  0x93   : > { %v387_v62 = vpop.permute.xlu1 %386  ;;  %v385_v63 = vpop.permute.xlu0 %384 }
  0x94   : > { %v425_v0 = vsel %vm422_vm0, %v1511_v61, %v385_v63  ;;  %v428_v6 = vsel %vm422_vm0, %v1510_v1, %v387_v62 }
  0x95   : > { %753 = vmatmul.mubr.bf16.vlgmr.msra.gmra.mrb[0].mxu0 %v425_v0 }
  0x96   : > { %1322 = vmatprep.mubr.msk.bf16.mxu0 %vm422_vm0, %v1286_v24 }
  0x97   : > { %v389_v2 = vpop.permute.xlu1 %388  ;;  %v401_v3 = vpop.permute.xlu0 %400 }
  0x98   : > { %v431_v4 = vsel %vm422_vm0, %v1757_v10, %v389_v2  ;;  %v449_v5 = vsel %vm422_vm0, %v1896_v46, %v401_v3 }
  0x99   : > { %813 = vmatmul.mubr.bf16.vlgmr.msra.gmra.mrb[0].mxu1 %v449_v5  ;;  %v1285_v9 = vcombine.low %v428_v6, %v431_v4 }
  0x9a   : > { %1328 = vmatprep.mubr.msk.bf16.mxu1 %vm422_vm0, %v1292_v28  ;;  %v491_v28 = vunpack.c.h.b16 %v431_v4 }
  0x9b   : > { %v405_v7 = vpop.permute.xlu1 %404  ;;  %v403_v14 = vpop.permute.xlu0 %402 }
  0x9c   : > { %v455_v18 = vsel %vm422_vm0, %v1781_v15, %v405_v7  ;;  %v452_v21 = vsel %vm422_vm0, %v1276_v57, %v403_v14 }
  0x9d   : > { %763 = vmatmul.mubr.bf16.gmra.mrb[4].mxu0 %v1285_v9  ;;  %v1291_v22 = vcombine.low %v452_v21, %v455_v18  ;;  %v503_v39 = vunpack.c.h.b16 %v455_v18 }
  0x9e   : > { %1323 = vmatprep.mubr.msk.bf16.mxu0 %vm422_vm0, %v1287_v29 }
  0x9f   : > { %v407_v10 = vpop.permute.xlu1 %406  ;;  %v391_v24 = vpop.permute.xlu0 %390 }
  0xa0   : > { %v458_v20 = vsel %vm422_vm0, %v1825_v27, %v407_v10  ;;  %v434_v25 = vsel %vm422_vm0, %v1751_v8, %v391_v24 }
  0xa1   : > { %v492_v35 = vunpack.c.l.b16 %v434_v25  ;;  %823 = vmatmul.mubr.bf16.gmra.mrb[4].mxu1 %v1291_v22  ;;  %v504_v15 = vunpack.c.l.b16 %v458_v20 }
  0xa2   : > { %1329 = vmatprep.mubr.msk.bf16.mxu1 %vm422_vm0, %v1293_v33 }
  0xa3   : > { %v393_v23 = vpop.permute.xlu0 %392  ;;  %v538_v26 = vpack.c.b16 %v492_v35, %v491_v28  ;;  %v409_v29 = vpop.permute.xlu1 %408  ;;  %v548_v27 = vpack.c.b16 %v504_v15, %v503_v39 }
  0xa4   : > { %v437_v44 = vsel %vm422_vm0, %v1766_v11, %v393_v23  ;;  %v461_v11 = vsel %vm422_vm0, %v1784_v16, %v409_v29  ;;  %v1512_v16 = vld [vmem:[%s1840_s7 + $0x10] sm:$0xff]   ;;  %s1261_s7 = sshll.u32 %s241_s5, 7 }
  0xa5   : > { %773 = vmatmul.mubr.bf16.gmra.mrb[8].mxu0 %v538_v26  ;;  %s2153_s21 = scalar_lea.vmem [#allocation2], %s1261_s7 }
  0xa6   : > { %1324 = vmatprep.mubr.msk.bf16.mxu0 %vm422_vm0, %v1896_v46  ;;  %s1148_s16 = sshll.u32 %s2153_s21, 4  ;;  %s2220_s16 = int_to_ptr.vmem [resolvable:$true] %s1148_s16 }
  0xa7   : > { %v395_v42 = vpop.permute.xlu0 %394  ;;  %v397_v8 = vpop.permute.xlu1 %396  ;;  %s1513_s10 = scalar_lea.vmem %s2220_s16, 2048  ;;  %p1520_p5 = scmp.lt.s32.totalorder %s2220_s16, %s1518_s11 }
  0xa8   : > { %v440_v33 = vsel %vm422_vm0, %v1873_v40, %v395_v42  ;;  %v443_v46 = vsel %vm422_vm0, %v1893_v45, %v397_v8  ;;  %p1514_p1 = scmp.ne.s32.totalorder %s2220_s16, %s1513_s10  ;;  %p1521_p6 = scmp.lt.s32.totalorder %s1519_s4, %s1513_s10 }
  0xa9   : > { %833 = vmatmul.mubr.bf16.gmra.mrb[8].mxu1 %v548_v27  ;;  %v1288_v12 = vcombine.low %v440_v33, %v443_v46  ;;  %v497_v37 = vunpack.c.h.b16 %v443_v46 }
  0xaa   : > { %1330 = vmatprep.mubr.msk.bf16.mxu1 %vm422_vm0, %v1918_v51  ;;  %p1515_p2 = pnand %p1514_p1, %p1684_p3  ;;  %p1522_p7 = por %p1521_p6, %p1520_p5 }
  0xab   : > { %v411_v30 = vpop.permute.xlu0 %410  ;;  %v413_v31 = vpop.permute.xlu1 %412 }
  0xac   : > { %v464_v32 = vsel %vm422_vm0, %v1858_v36, %v411_v30  ;;  %p1516_p4 = pneg %p1515_p2 }
  0xad   : > { %783 = vmatmul.mubr.bf16.gmra.mrb[12].mxu0 %v437_v44 }
  0xae   : > { %1325 = vmatprep.mubr.msk.bf16.mxu0 %vm422_vm0, %v1289_v34  ;;  %v467_v34 = vsel %vm422_vm0, %v1884_v43, %v413_v31  ;;  %p1523_p9 = pnand %p1522_p7, %p1516_p4 }
  0xaf   : > { %v399_v47 = vpop.permute.xlu0 %398  ;;  %v415_v45 = vpop.permute.xlu1 %414  ;;  %v1294_v38 = vcombine.low %v464_v32, %v467_v34  ;;  %v509_v43 = vunpack.c.h.b16 %v467_v34 }
  0xb0   : > { %v446_v40 = vsel %vm422_vm0, %v1910_v49, %v399_v47  ;;  %v470_v36 = vsel %vm422_vm0, %v1927_v53, %v415_v45 }
  0xb1   : > { %843 = vmatmul.mubr.bf16.gmra.mrb[12].mxu1 %v461_v11  ;;  %v510_v48 = vunpack.c.l.b16 %v470_v36 }
  0xb2   : > { %1331 = vmatprep.mubr.msk.bf16.mxu1 %vm422_vm0, %v1295_v41  ;;  %v498_v41 = vunpack.c.l.b16 %v446_v40 }
  0xb3   : > { %v553_v50 = vpack.c.b16 %v510_v48, %v509_v43 }
  0xb4   : > { %v543_v49 = vpack.c.b16 %v498_v41, %v497_v37 }
  0xb5   : > { %793 = vmatmul.mubr.bf16.gmra.mrb[16].mxu0 %v1288_v12 }
  0xb6   : > { %1326 = vmatprep.mubr.msk.bf16.mxu0 %vm422_vm0, %v1290_v19 }
  0xb9   : > { %853 = vmatmul.mubr.bf16.gmra.mrb[16].mxu1 %v1294_v38 }
  0xba   : > { %1332 = vmatprep.mubr.msk.bf16.mxu1 %vm422_vm0, %v1512_v16 }
  0xbd   : > { %803 = vmatmul.mubr.bf16.gmra.mrb[20].mxu0 %v543_v49 }
  0xc1   : > { %863 = vmatmul.mubr.bf16.gmra.mrb[20].mxu1 %v553_v50 }
 0x168   : > { %v2019_v51 = vpop.f32.mrb[0].mxu0 }
 0x169   : > { %v756_v13 = vpop.f32.mrb[1].mxu0  ;;  %v898_v19 = vrot.slane %v2019_v51, 1 }
 0x16a   : > { %v2021_v17 = vpop.f32.mrb[2].mxu0  ;;  %v1027_v54 = vrot.slane %v756_v13, 2 }
 0x16b   : > { %v899_v52 = vrot.slane %v2021_v17, 1  ;;  %v760_v53 = vpop.f32.mrb[3].mxu0 }
 0x16c   : > { %v1028_v55 = vrot.slane %v760_v53, 2  ;;  %v2025_v56 = vpop.f32.mrb[0].mxu1 }
 0x16d   : > { %v816_v57 = vpop.f32.mrb[1].mxu1  ;;  %v900_v58 = vsel %vm897_vm1, %v898_v19, %v899_v52  ;;  %v918_v61 = vrot.slane %v2025_v56, 1 }
 0x16e   : > { %v2028_v59 = vpop.f32.mrb[2].mxu1  ;;  %938 = vrot.lane.b32.xlu0 %v900_v58, %s1609_s27  ;;  %v2032_v60 = vsel %vm1026_vm2, %v1027_v54, %v1028_v55  ;;  %v1047_v0 = vrot.slane %v816_v57, 2 }
 0x16f   : > { %v919_v62 = vrot.slane %v2028_v59, 1  ;;  %v820_v63 = vpop.f32.mrb[3].mxu1 }
 0x170   : > { %v1048_v1 = vrot.slane %v820_v63, 2  ;;  %v764_v2 = vpop.f32.mrb[4].mxu0 }
 0x171   : > { %v901_v3 = vrot.slane %v764_v2, 1  ;;  %v766_v4 = vpop.f32.mrb[5].mxu0  ;;  %v920_v5 = vsel %vm897_vm1, %v918_v61, %v919_v62 }
 0x172   : > { %v1030_v6 = vrot.slane %v766_v4, 2  ;;  %954 = vrot.lane.b32.xlu0 %v920_v5, %s1609_s27  ;;  %v2038_v7 = vpop.f32.mrb[6].mxu0  ;;  %v2041_v9 = vsel %vm1026_vm2, %v1047_v0, %v1048_v1 }
 0x173   : > { %v770_v14 = vpop.f32.mrb[7].mxu0  ;;  %v902_v18 = vsel %vm897_vm1, %v899_v52, %v901_v3  ;;  %v903_v26 = vrot.slane %v2038_v7, 1 }
 0x174   : > { %v824_v21 = vpop.f32.mrb[4].mxu1  ;;  %940 = vrot.lane.b32.xlu1 %v902_v18, %s1609_s27  ;;  %v2046_v10 = vsel %vm1026_vm2, %v1028_v55, %v1030_v6  ;;  %v1032_v27 = vrot.slane %v770_v14, 2 }
 0x175   : > { %v921_v22 = vrot.slane %v824_v21, 1  ;;  %v826_v24 = vpop.f32.mrb[5].mxu1 }
 0x176   : > { %v1050_v20 = vrot.slane %v826_v24, 2  ;;  %v2048_v25 = vpop.f32.mrb[6].mxu1 }
 0x177   : > { %v830_v28 = vpop.f32.mrb[7].mxu1  ;;  %v922_v35 = vsel %vm897_vm1, %v919_v62, %v921_v22  ;;  %v923_v47 = vrot.slane %v2048_v25, 1 }
 0x178   : > { %956 = vrot.lane.b32.xlu1 %v922_v35, %s1609_s27  ;;  %v2052_v15 = vpop.f32.mrb[8].mxu0  ;;  %v2055_v23 = vsel %vm1026_vm2, %v1048_v1, %v1050_v20  ;;  %v1052_v40 = vrot.slane %v830_v28, 2 }
 0x179   : > { %v904_v29 = vrot.slane %v2052_v15, 1  ;;  %v776_v39 = vpop.f32.mrb[9].mxu0 }
 0x17a   : > { %v1033_v42 = vrot.slane %v776_v39, 2  ;;  %v778_v8 = vpop.f32.mrb[10].mxu0 }
 0x17b   : > { %v906_v44 = vrot.slane %v778_v8, 1  ;;  %v780_v30 = vpop.f32.mrb[11].mxu0  ;;  %v905_v31 = vsel %vm897_vm1, %v903_v26, %v904_v29 }
 0x17c   : > { %v1035_v33 = vrot.slane %v780_v30, 2  ;;  %v2060_v46 = vpop.f32.mrb[8].mxu1  ;;  %942 = vrot.lane.b32.xlu0 %v905_v31, %s1609_s27  ;;  %v2064_v11 = vsel %vm1026_vm2, %v1032_v27, %v1033_v42 }
 0x17d   : > { %v924_v12 = vrot.slane %v2060_v46, 1  ;;  %v836_v32 = vpop.f32.mrb[9].mxu1  ;;  %v907_v34 = vsel %vm897_vm1, %v904_v29, %v906_v44 }
 0x17e   : > { %v1053_v45 = vrot.slane %v836_v32, 2  ;;  %v838_v16 = vpop.f32.mrb[10].mxu1  ;;  %944 = vrot.lane.b32.xlu1 %v907_v34, %s1609_s27  ;;  %v2071_v37 = vsel %vm1026_vm2, %v1033_v42, %v1035_v33 }
 0x17f   : > { %v926_v38 = vrot.slane %v838_v16, 1  ;;  %v840_v41 = vpop.f32.mrb[11].mxu1  ;;  %v925_v36 = vsel %vm897_vm1, %v923_v47, %v924_v12 }
 0x180   : > { %v1055_v43 = vrot.slane %v840_v41, 2  ;;  %958 = vrot.lane.b32.xlu0 %v925_v36, %s1609_s27  ;;  %v2075_v48 = vpop.f32.mrb[12].mxu0  ;;  %v2078_v49 = vsel %vm1026_vm2, %v1052_v40, %v1053_v45 }
 0x181   : > { %v786_v50 = vpop.f32.mrb[13].mxu0  ;;  %v927_v13 = vsel %vm897_vm1, %v924_v12, %v926_v38  ;;  %v908_v53 = vrot.slane %v2075_v48, 1 }
 0x182   : > { %960 = vrot.lane.b32.xlu1 %v927_v13, %s1609_s27  ;;  %v2082_v19 = vpop.f32.mrb[14].mxu0  ;;  %v2085_v52 = vsel %vm1026_vm2, %v1053_v45, %v1055_v43  ;;  %v1037_v57 = vrot.slane %v786_v50, 2 }
 0x183   : > { %v909_v54 = vrot.slane %v2082_v19, 1  ;;  %v790_v55 = vpop.f32.mrb[15].mxu0 }
 0x184   : > { %v1038_v58 = vrot.slane %v790_v55, 2  ;;  %v2089_v61 = vpop.f32.mrb[12].mxu1 }
 0x185   : > { %v846_v62 = vpop.f32.mrb[13].mxu1  ;;  %v910_v63 = vsel %vm897_vm1, %v908_v53, %v909_v54  ;;  %v928_v2 = vrot.slane %v2089_v61, 1 }
 0x186   : > { %v2092_v0 = vpop.f32.mrb[14].mxu1  ;;  %946 = vrot.lane.b32.xlu0 %v910_v63, %s1609_s27  ;;  %v2096_v1 = vsel %vm1026_vm2, %v1037_v57, %v1038_v58  ;;  %v1057_v5 = vrot.slane %v846_v62, 2 }
 0x187   : > { %v929_v3 = vrot.slane %v2092_v0, 1  ;;  %v850_v4 = vpop.f32.mrb[15].mxu1 }
 0x188   : > { %v1058_v6 = vrot.slane %v850_v4, 2  ;;  %v794_v14 = vpop.f32.mrb[16].mxu0 }
 0x189   : > { %v911_v18 = vrot.slane %v794_v14, 1  ;;  %v796_v21 = vpop.f32.mrb[17].mxu0  ;;  %v930_v22 = vsel %vm897_vm1, %v928_v2, %v929_v3 }
 0x18a   : > { %v1040_v24 = vrot.slane %v796_v21, 2  ;;  %962 = vrot.lane.b32.xlu0 %v930_v22, %s1609_s27  ;;  %v2102_v20 = vpop.f32.mrb[18].mxu0  ;;  %v2105_v28 = vsel %vm1026_vm2, %v1057_v5, %v1058_v6 }
 0x18b   : > { %v800_v35 = vpop.f32.mrb[19].mxu0  ;;  %v912_v26 = vsel %vm897_vm1, %v909_v54, %v911_v18  ;;  %v913_v12 = vrot.slane %v2102_v20, 1 }
 0x18c   : > { %v854_v29 = vpop.f32.mrb[16].mxu1  ;;  %948 = vrot.lane.b32.xlu1 %v912_v26, %s1609_s27  ;;  %v2110_v39 = vsel %vm1026_vm2, %v1038_v58, %v1040_v24  ;;  %v1042_v40 = vrot.slane %v800_v35, 2 }
 0x18d   : > { %v931_v27 = vrot.slane %v854_v29, 1  ;;  %v856_v42 = vpop.f32.mrb[17].mxu1 }
 0x18e   : > { %v1060_v8 = vrot.slane %v856_v42, 2  ;;  %v2112_v44 = vpop.f32.mrb[18].mxu1 }
 0x18f   : > { %v860_v30 = vpop.f32.mrb[19].mxu1  ;;  %v932_v31 = vsel %vm897_vm1, %v929_v3, %v931_v27  ;;  %v933_v53 = vrot.slane %v2112_v44, 1 }
 0x190   : > { %964 = vrot.lane.b32.xlu1 %v932_v31, %s1609_s27  ;;  %v2116_v33 = vpop.f32.mrb[20].mxu0  ;;  %v2119_v47 = vsel %vm1026_vm2, %v1058_v6, %v1060_v8  ;;  %v1062_v58 = vrot.slane %v860_v30, 2 }
 0x191   : > { %v914_v32 = vrot.slane %v2116_v33, 1  ;;  %v806_v34 = vpop.f32.mrb[21].mxu0 }
 0x192   : > { %v1043_v45 = vrot.slane %v806_v34, 2  ;;  %v808_v16 = vpop.f32.mrb[22].mxu0 }
 0x193   : > { %v916_v38 = vrot.slane %v808_v16, 1  ;;  %v810_v41 = vpop.f32.mrb[23].mxu0  ;;  %v915_v36 = vsel %vm897_vm1, %v913_v12, %v914_v32 }
 0x194   : > { %v1045_v43 = vrot.slane %v810_v41, 2  ;;  %v2124_v50 = vpop.f32.mrb[20].mxu1  ;;  %950 = vrot.lane.b32.xlu0 %v915_v36, %s1609_s27  ;;  %v2128_v13 = vsel %vm1026_vm2, %v1042_v40, %v1043_v45 }
 0x195   : > { %v934_v54 = vrot.slane %v2124_v50, 1  ;;  %v866_v55 = vpop.f32.mrb[21].mxu1  ;;  %v917_v57 = vsel %vm897_vm1, %v914_v32, %v916_v38 }
 0x196   : > { %v1063_v62 = vrot.slane %v866_v55, 2  ;;  %v868_v63 = vpop.f32.mrb[22].mxu1  ;;  %952 = vrot.lane.b32.xlu1 %v917_v57, %s1609_s27  ;;  %v2135_v2 = vsel %vm1026_vm2, %v1043_v45, %v1045_v43 }
 0x197   : > { %v936_v3 = vrot.slane %v868_v63, 1  ;;  %v870_v4 = vpop.f32.mrb[23].mxu1  ;;  %v935_v5 = vsel %vm897_vm1, %v933_v53, %v934_v54 }
 0x198   : > { %v1065_v6 = vrot.slane %v870_v4, 2  ;;  %966 = vrot.lane.b32.xlu0 %v935_v5, %s1609_s27  ;;  %v2140_v14 = vsel %vm1026_vm2, %v1062_v58, %v1063_v62 }
 0x199   : > { %v937_v18 = vsel %vm897_vm1, %v934_v54, %v936_v3 }
 0x19a   : > { %968 = vrot.lane.b32.xlu1 %v937_v18, %s1609_s27  ;;  %v2145_v21 = vsel %vm1026_vm2, %v1063_v62, %v1065_v6  ;;  %s1347_s27 = sshll.u32 %s1591_s15, 4 }
 0x19b   : > { %s1145_s28 = sadd.s32 %s1347_s27, %s1336_s24 }
 0x19c   : > { %s1337_s15 = sshll.u32 %s1145_s28, 7 }
 0x19d   : > { %s2218_s9 = scalar_lea.hbm %s2283_s3, %s1337_s15 }
 0x1e0   : > { %v939_v22 = vpop.permute.xlu0 %938 }
 0x1e1   : > { %v986_v24 = vadd.f32 %v939_v22, %v2019_v51 }
 0x1e3   : > { %v1083_v35 = vadd.f32 %v2032_v60, %v986_v24 }
 0x1e4   : > { %v955_v26 = vpop.permute.xlu0 %954 }
 0x1e5   : > { %v1099_v29 = vmax.f32 %v1083_v35, 0.0  ;;  %v994_v27 = vadd.f32 %v955_v26, %v2025_v56 }
 0x1e6   : > { %v941_v42 = vpop.permute.xlu1 %940 }
 0x1e7   : > { %1115 = vst.msk [vmem:[%s2153_s21] sm:$0xff] %vm422_vm0, %v1099_v29  ;;  %v1091_v8 = vadd.f32 %v2041_v9, %v994_v27  ;;  %v987_v30 = vadd.f32 %v941_v42, %v2021_v17 }
 0x1e9   : > { %v1107_v51 = vmax.f32 %v1091_v8, 0.0  ;;  %v1084_v60 = vadd.f32 %v2046_v10, %v987_v30 }
 0x1ea   : > { %v957_v31 = vpop.permute.xlu1 %956 }
 0x1eb   : > { %1123 = vst.msk [vmem:[%s2153_s21 + $0x40] sm:$0xff] %vm422_vm0, %v1107_v51  ;;  %v1100_v56 = vmax.f32 %v1084_v60, 0.0  ;;  %v995_v12 = vadd.f32 %v957_v31, %v2028_v59 }
 0x1ed   : > { %1116 = vst.msk [vmem:[%s2153_s21 + $0x8] sm:$0xff] %vm422_vm0, %v1100_v56  ;;  %v1092_v32 = vadd.f32 %v2055_v23, %v995_v12 }
 0x1ee   : > { %v943_v34 = vpop.permute.xlu0 %942 }
 0x1ef   : > { %v1108_v40 = vmax.f32 %v1092_v32, 0.0  ;;  %v988_v9 = vadd.f32 %v943_v34, %v2038_v7 }
 0x1f0   : > { %v945_v17 = vpop.permute.xlu1 %944 }
 0x1f1   : > { %1124 = vst.msk [vmem:[%s2153_s21 + $0x48] sm:$0xff] %vm422_vm0, %v1108_v40  ;;  %v1085_v10 = vadd.f32 %v2064_v11, %v988_v9  ;;  %v989_v45 = vadd.f32 %v945_v17, %v2052_v15 }
 0x1f2   : > { %v959_v16 = vpop.permute.xlu0 %958 }
 0x1f3   : > { %v1101_v59 = vmax.f32 %v1085_v10, 0.0  ;;  %v1086_v38 = vadd.f32 %v2071_v37, %v989_v45  ;;  %v996_v23 = vadd.f32 %v959_v16, %v2048_v25 }
 0x1f4   : > { %v961_v41 = vpop.permute.xlu1 %960 }
 0x1f5   : > { %1117 = vst.msk [vmem:[%s2153_s21 + $0x10] sm:$0xff] %vm422_vm0, %v1101_v59  ;;  %v1102_v36 = vmax.f32 %v1086_v38, 0.0  ;;  %v1093_v7 = vadd.f32 %v2078_v49, %v996_v23  ;;  %v997_v43 = vadd.f32 %v961_v41, %v2060_v46 }
 0x1f7   : > { %1118 = vst.msk [vmem:[%s2153_s21 + $0x18] sm:$0xff] %vm422_vm0, %v1102_v36  ;;  %v1109_v11 = vmax.f32 %v1093_v7, 0.0  ;;  %v1094_v15 = vadd.f32 %v2085_v52, %v997_v43 }
 0x1f8   : > { %v947_v53 = vpop.permute.xlu0 %946 }
 0x1f9   : > { %1125 = vst.msk [vmem:[%s2153_s21 + $0x50] sm:$0xff] %vm422_vm0, %v1109_v11  ;;  %v1110_v37 = vmax.f32 %v1094_v15, 0.0  ;;  %v990_v25 = vadd.f32 %v947_v53, %v2075_v48 }
 0x1fb   : > { %1126 = vst.msk [vmem:[%s2153_s21 + $0x58] sm:$0xff] %vm422_vm0, %v1110_v37  ;;  %v1087_v54 = vadd.f32 %v2096_v1, %v990_v25 }
 0x1fc   : > { %v963_v49 = vpop.permute.xlu0 %962 }
 0x1fd   : > { %v1103_v55 = vmax.f32 %v1087_v54, 0.0  ;;  %v998_v46 = vadd.f32 %v963_v49, %v2089_v61 }
 0x1fe   : > { %v949_v57 = vpop.permute.xlu1 %948 }
 0x1ff   : > { %1119 = vst.msk [vmem:[%s2153_s21 + $0x20] sm:$0xff] %vm422_vm0, %v1103_v55  ;;  %v1095_v52 = vadd.f32 %v2105_v28, %v998_v46  ;;  %v991_v58 = vadd.f32 %v949_v57, %v2082_v19 }
 0x201   : > { %v1111_v48 = vmax.f32 %v1095_v52, 0.0  ;;  %v1088_v62 = vadd.f32 %v2110_v39, %v991_v58 }
 0x202   : > { %v965_v63 = vpop.permute.xlu1 %964 }
 0x203   : > { %1127 = vst.msk [vmem:[%s2153_s21 + $0x60] sm:$0xff] %vm422_vm0, %v1111_v48  ;;  %v1104_v1 = vmax.f32 %v1088_v62, 0.0  ;;  %v999_v3 = vadd.f32 %v965_v63, %v2092_v0 }
 0x205   : > { %1120 = vst.msk [vmem:[%s2153_s21 + $0x28] sm:$0xff] %vm422_vm0, %v1104_v1  ;;  %v1096_v61 = vadd.f32 %v2119_v47, %v999_v3 }
 0x206   : > { %v951_v4 = vpop.permute.xlu0 %950 }
 0x207   : > { %v1112_v5 = vmax.f32 %v1096_v61, 0.0  ;;  %v992_v28 = vadd.f32 %v951_v4, %v2102_v20 }
 0x208   : > { %v953_v19 = vpop.permute.xlu1 %952 }
 0x209   : > { %1128 = vst.msk [vmem:[%s2153_s21 + $0x68] sm:$0xff] %vm422_vm0, %v1112_v5  ;;  %v1089_v39 = vadd.f32 %v2128_v13, %v992_v28  ;;  %v993_v0 = vadd.f32 %v953_v19, %v2116_v33 }
 0x20a   : > { %v967_v6 = vpop.permute.xlu0 %966 }
 0x20b   : > { %v1105_v47 = vmax.f32 %v1089_v39, 0.0  ;;  %v1090_v18 = vadd.f32 %v2135_v2, %v993_v0  ;;  %v1000_v20 = vadd.f32 %v967_v6, %v2112_v44 }
 0x20c   : > { %v969_v22 = vpop.permute.xlu1 %968 }
 0x20d   : > { %1121 = vst.msk [vmem:[%s2153_s21 + $0x30] sm:$0xff] %vm422_vm0, %v1105_v47  ;;  %v1106_v24 = vmax.f32 %v1090_v18, 0.0  ;;  %v1097_v35 = vadd.f32 %v2140_v14, %v1000_v20  ;;  %v1001_v13 = vadd.f32 %v969_v22, %v2124_v50 }
 0x20f   : > { %1122 = vst.msk [vmem:[%s2153_s21 + $0x38] sm:$0xff] %vm422_vm0, %v1106_v24  ;;  %v1113_v33 = vmax.f32 %v1097_v35, 0.0  ;;  %v1098_v2 = vadd.f32 %v2145_v21, %v1001_v13 }
 0x211   : > { %1129 = vst.msk [vmem:[%s2153_s21 + $0x70] sm:$0xff] %vm422_vm0, %v1113_v33  ;;  %v1114_v44 = vmax.f32 %v1098_v2, 0.0 }
 0x213   : > { %1130 = vst.msk [vmem:[%s2153_s21 + $0x78] sm:$0xff] %vm422_vm0, %v1114_v44 }
 0x214   : > { %1526 = shalt.err (!%p1523_p9)
}
 0x215   : > { %s1527_s5 = scalar_lea.hbm %s2218_s9, 2048  ;;  %s1531_s27 = scalar_lea.hbm %s2283_s3, 8192 }
 0x216   : > { %p1528_p10 = scmp.ne.s32.totalorder %s2218_s9, %s1527_s5  ;;  %p1532_p13 = scmp.lt.u32.totalorder %s2218_s9, %s2283_s3 }
 0x217   : > { %p1533_p0 = scmp.lt.u32.totalorder %s1531_s27, %s1527_s5  ;;  %p1535_p2 = scmp.lt.u32.totalorder %s1527_s5, %s2218_s9 }
 0x218   : > { %p1529_p11 = pnand %p1528_p10, %p1684_p3 }
 0x219   : > { %p1534_p1 = por %p1533_p0, %p1532_p13 }
 0x21a   : > { %p1530_p12 = pneg %p1529_p11 }
 0x21b   : > { %p1536_p4 = por %p1535_p2, %p1534_p1 }
 0x21d   : > { %p1537_p5 = pnand %p1536_p4, %p1530_p12 }
 0x21f   : > { %1540 = shalt.err (!%p1537_p5)
}
 0x220   : > { %s1611_s15 = smov 128   ;;  %s1612_s20 = smov 8  }
 0x221   : > { %1377 = dma.vmem_to_hbm [thread:$0]  (%p1684_p3), %s2220_s16, 2048, %s2218_s9, %s2228_s6, %s1611_s15, %s1611_s15, %s1612_s20  }
 0x222 PF: > { %p1383_p6 = scmp.ge.s32.totalorder %s1607_s19, 2  ;;  %s1163_s29 = sand.u32 1, %s1579_s12  }
 0x223   : > { %s1164_s10 = scalar_lea.sflag [#allocation3], %s1163_s29 }
 0x224   : > { %p1380_p7 = pnand %p1383_p6, %p1693_p8 }
 0x226   : > { %1574 = dma.done.wait (!%p1380_p7), %s1164_s10, 2048  }
 0x227   : > { %1576 = vsyncadd (!%p1380_p7), %s1164_s10, 4294965248  ;;  %s16_s19 = sadd.s32 1, %s1607_s19   ;;  %s2289_s12 = smov %s1583_s13 }
 0x228   : > { %p13_p9 = scmp.ge.s32.totalorder %s16_s19, 6   ;;  %s2290_s13 = smov %s1587_s14 }
 0x229   : > { %s2291_s14 = smov %s1702_s30  ;;  %s2292_s15 = smov %s1599_s17 }
 0x22a   : > { %s2293_s16 = smov %s1603_s18  ;;  %s2294_s17 = smov %s2297_s22 }
 0x22b   : > { %s2295_s18 = smov %s2301_s23  ;;  %15 = sbr.rel (!%p13_p9) target bundleno = 5 (0x5), region = 70 }
 0x232   :  { %1169 = vsyncpa [#allocation3], 1 }
 0x233   :  { %1171 = vsyncpa [#allocation3 + $0x1], 1 }

</bundles_post_ra>
